<compile_context>
chip_gen: v5e
topology: v5e:2x2
jax: 0.10.0
libtpu: 0.0.40
codegen_flags: <defaults>
</compile_context>

<pallas_src>
import functools

import jax
import jax.numpy as jnp
from jax import lax
from jax.experimental import pallas as pl
from jax.experimental.pallas import tpu as pltpu

_BN_EPS = 1e-5


# ----------------------------------------------------------------------------- kernels
def _stats_kernel(x_ref, w1_ref, b1_ref, stats_ref, *, m_true):
    """Pass A: accumulate per-column sum / sumsq of h = x @ W1^T + b1."""
    # x_ref: (TM, in_size) bf16;  w1_ref: (in_size, out_pad) bf16
    # b1_ref: (1, out_pad) f32;   stats_ref: (2, out_pad) f32 accumulator
    i = pl.program_id(0)

    @pl.when(i == 0)
    def _():
        stats_ref[...] = jnp.zeros_like(stats_ref)

    h = jnp.dot(x_ref[...], w1_ref[...], preferred_element_type=jnp.float32)
    h = h + b1_ref[...]

    tm = x_ref.shape[0]
    rows = i * tm + lax.broadcasted_iota(jnp.int32, (tm, 1), 0)
    hm = jnp.where(rows < m_true, h, 0.0)          # mask padded rows out of the stats

    s = jnp.sum(hm, axis=0, keepdims=True)
    ss = jnp.sum(hm * hm, axis=0, keepdims=True)
    stats_ref[...] += jnp.concatenate([s, ss], axis=0)


def _out_kernel(x_ref, w1_ref, scale_ref, shift_ref, w2_ref, b2_ref, o_ref):
    """Pass B: folded BN affine + ReLU + final linear, lane-dense output."""
    # h = (x @ W1^T) * scale + shift   (b1 and BN affine folded into scale/shift)
    h = jnp.dot(x_ref[...], w1_ref[...], preferred_element_type=jnp.float32)
    h = h * scale_ref[...] + shift_ref[...]
    h = jnp.maximum(h, 0.0)
    # Lane-dense (1, TM) result: contract out_pad of w2 with out_pad of h
    # (no materialized transpose, no 1-lane output column).
    y = lax.dot_general(w2_ref[...], h, (((1,), (1,)), ((), ())),
                        preferred_element_type=jnp.float32)
    o_ref[...] = (y + b2_ref[...]).astype(o_ref.dtype)


# ----------------------------------------------------------------------------- helpers
def _round_up(x, m):
    return (x + m - 1) // m * m


def _vmem_budget():
    """(vmem_limit_bytes, per-call tile budget) sized for the local TPU generation."""
    cap = 64 << 20
    try:
        info = pltpu.get_tpu_info()
        cap = int(getattr(info, "vmem_capacity_bytes", cap) or cap)
    except Exception:
        pass
    if cap >= (128 << 20):           # v5e / v6e: 128 MiB physical VMEM
        return 100 << 20, 72 << 20
    return 48 << 20, 28 << 20        # v7x (64 MiB) or unknown: stay conservative


def _pick_tile(m, in_size, out_pad, tile_budget):
    """Largest 128-aligned row tile whose working set fits the budget."""
    # rough per-row residency: double-buffered bf16 x + f32 h/temps + output
    per_row = 2 * 2 * in_size + 3 * 4 * out_pad + 2 * 4
    tm_cap = max(128, min(4096, tile_budget // per_row))
    tm_cap = max(128, (tm_cap // 128) * 128)
    n_tiles = -(-m // tm_cap)
    tm = _round_up(-(-m // n_tiles), 128)
    return tm, n_tiles


# ----------------------------------------------------------------------------- wrapper
def outlayer_forward(x, params, *, compute_dtype=jnp.bfloat16):
    """x: (B, N, in_size) float32 -> (B, N, 1) float32 (OutLayer, layer_num=2)."""
    B, N, in_size = x.shape
    w1, b1, gamma, beta, w2, b2 = params
    out_size = w1.shape[0]
    M = B * N

    out_pad = _round_up(out_size, 128)
    vmem_limit, tile_budget = _vmem_budget()
    TM, n_tiles = _pick_tile(M, in_size, out_pad, tile_budget)
    M_pad = TM * n_tiles

    # ---- host-side weight prep (done once; no in-kernel transposes) ----
    pad_c = out_pad - out_size
    w1_t = jnp.pad(w1.T.astype(compute_dtype), ((0, 0), (0, pad_c)))        # (in, out_pad)
    b1_p = jnp.pad(b1.reshape(1, -1).astype(jnp.float32), ((0, 0), (0, pad_c)))
    g_p = jnp.pad(gamma.reshape(1, -1).astype(jnp.float32), ((0, 0), (0, pad_c)),
                  constant_values=1.0)
    bt_p = jnp.pad(beta.reshape(1, -1).astype(jnp.float32), ((0, 0), (0, pad_c)))
    w2_p = jnp.pad(w2.reshape(1, -1).astype(jnp.float32), ((0, 0), (0, pad_c)))
    b2_p = b2.reshape(1, 1).astype(jnp.float32)

    x2d = jnp.pad(x.reshape(M, in_size), ((0, M_pad - M), (0, 0))).astype(compute_dtype)

    def const_spec(shape):
        return pl.BlockSpec(shape, lambda i: (0, 0))

    # ---- pass A: per-column sum / sum-of-squares of h = x @ W1^T + b1 ----
    flops_a = 2 * M_pad * in_size * out_pad + 4 * M_pad * out_pad
    bytes_a = (M_pad * in_size * x2d.dtype.itemsize
               + w1_t.size * w1_t.dtype.itemsize + out_pad * 4 + 2 * out_pad * 4)
    stats = pl.pallas_call(
        functools.partial(_stats_kernel, m_true=M),
        out_shape=jax.ShapeDtypeStruct((2, out_pad), jnp.float32),
        grid=(n_tiles,),
        in_specs=[
            pl.BlockSpec((TM, in_size), lambda i: (i, 0)),
            const_spec((in_size, out_pad)),
            const_spec((1, out_pad)),
        ],
        out_specs=const_spec((2, out_pad)),
        compiler_params=pltpu.CompilerParams(
            dimension_semantics=("arbitrary",),
            vmem_limit_bytes=vmem_limit),
        cost_estimate=pl.CostEstimate(flops=flops_a, transcendentals=0,
                                      bytes_accessed=bytes_a),
    )(x2d, w1_t, b1_p)

    # ---- fold BN (+ b1) into per-column scale / shift (tiny (1, out_pad) math) ----
    mean = stats[0:1] / M
    var = jnp.maximum(stats[1:2] / M - mean * mean, 0.0)      # biased variance
    scale = g_p * lax.rsqrt(var + _BN_EPS)
    shift = bt_p + (b1_p - mean) * scale

    # ---- pass B: normalize + ReLU + final linear -> lane-dense (1, M_pad) ----
    flops_b = 2 * M_pad * in_size * out_pad + 3 * M_pad * out_pad + 2 * M_pad * out_pad
    bytes_b = (M_pad * in_size * x2d.dtype.itemsize
               + w1_t.size * w1_t.dtype.itemsize + 4 * out_pad * 4 + M_pad * 4)
    y = pl.pallas_call(
        _out_kernel,
        out_shape=jax.ShapeDtypeStruct((1, M_pad), jnp.float32),
        grid=(n_tiles,),
        in_specs=[
            pl.BlockSpec((TM, in_size), lambda i: (i, 0)),
            const_spec((in_size, out_pad)),
            const_spec((1, out_pad)),
            const_spec((1, out_pad)),
            const_spec((1, out_pad)),
            const_spec((1, 1)),
        ],
        out_specs=pl.BlockSpec((1, TM), lambda i: (0, i)),
        compiler_params=pltpu.CompilerParams(
            dimension_semantics=("parallel",),
            vmem_limit_bytes=vmem_limit),
        cost_estimate=pl.CostEstimate(flops=flops_b, transcendentals=0,
                                      bytes_accessed=bytes_b),
    )(x2d, w1_t, scale, shift, w2_p, b2_p)

    return y[0, :M].reshape(B, N, 1)


# ----------------------------------------------------------------------------- params / ref
def init_params(key, in_size, out_size):
    """Deterministic params matching OutLayer(in_size, out_size, layer_num=2)."""
    k1, k2, k3, k4 = jax.random.split(key, 4)
    lim1 = 1.0 / jnp.sqrt(in_size)
    w1 = jax.random.uniform(k1, (out_size, in_size), jnp.float32, -lim1, lim1)
    b1 = jax.random.uniform(k2, (out_size,), jnp.float32, -lim1, lim1)
    gamma = jnp.ones((out_size,), jnp.float32)     # BatchNorm1d default affine init
    beta = jnp.zeros((out_size,), jnp.float32)
    lim2 = 1.0 / jnp.sqrt(out_size)
    w2 = jax.random.uniform(k3, (1, out_size), jnp.float32, -lim2, lim2)
    b2 = jax.random.uniform(k4, (1,), jnp.float32, -lim2, lim2)
    return (w1, b1, gamma, beta, w2, b2)


def _reference(x, params, *, compute_dtype=jnp.float32):
    """Pure-JAX reference of the PyTorch forward (train-mode batch-stat BN)."""
    w1, b1, gamma, beta, w2, b2 = params
    B, N, _ = x.shape
    xf = x.reshape(B * N, -1)
    h = jnp.dot(xf.astype(compute_dtype), w1.T.astype(compute_dtype),
                preferred_element_type=jnp.float32) + b1
    m = h.mean(axis=0, keepdims=True)
    v = ((h - m) ** 2).mean(axis=0, keepdims=True)
    h = (h - m) / jnp.sqrt(v + _BN_EPS) * gamma + beta
    h = jnp.maximum(h, 0.0)
    y = h @ w2.T + b2
    return y.reshape(B, N, 1)


if __name__ == "__main__":
    B, N = 2, 8
    in_size, out_size = 32, 16

    key = jax.random.PRNGKey(0)
    kx, kp = jax.random.split(key)
    x = jax.random.normal(kx, (B, N, in_size), jnp.float32)
    params = init_params(kp, in_size, out_size)

    out = jax.block_until_ready(outlayer_forward(x, params))
    assert out.shape == (B, N, 1), out.shape

    # Tight check against a reference that uses the same bf16 first-matmul dtype.
    ref_bf16 = _reference(x, params, compute_dtype=jnp.bfloat16)
    assert jnp.allclose(out, ref_bf16, atol=2e-3, rtol=2e-3), \
        float(jnp.max(jnp.abs(out - ref_bf16)))

    # Loose check against exact f32 module semantics (bf16 first-matmul tolerance).
    ref_f32 = _reference(x, params, compute_dtype=jnp.float32)
    assert jnp.allclose(out, ref_f32, atol=5e-2, rtol=5e-2), \
        float(jnp.max(jnp.abs(out - ref_f32)))

    print("KERNEL_OK")
</pallas_src>

<mosaic_0001>
module attributes {stable_mosaic.version = 11 : i64} {
  func.func @_stats_kernel(%arg0: i32, %arg1: memref<128x32xbf16, #tpu.memory_space<vmem>>, %arg2: memref<32x128xbf16, #tpu.memory_space<vmem>>, %arg3: memref<1x128xf32, #tpu.memory_space<vmem>>, %arg4: memref<2x128xf32, #tpu.memory_space<vmem>>) attributes {dimension_semantics = [#tpu.dimension_semantics<arbitrary>], iteration_bounds = array<i64: 1>, scalar_prefetch = 0 : i64, scratch_operands = 0 : i64, tpu.core_type = #tpu.core_type<tc>, window_params = [{transform_indices = @transform_0, window_bounds = array<i64: 128, 32>}, {pipeline_mode = #tpu.pipeline_mode<synchronous>, transform_indices = @transform_1, window_bounds = array<i64: 32, 128>}, {pipeline_mode = #tpu.pipeline_mode<synchronous>, transform_indices = @transform_2, window_bounds = array<i64: 1, 128>}, {pipeline_mode = #tpu.pipeline_mode<synchronous>, transform_indices = @transform_3, window_bounds = array<i64: 2, 128>}]} {
    %c0_i32 = arith.constant 0 : i32
    %0 = arith.cmpi eq, %arg0, %c0_i32 : i32
    %1 = arith.extui %0 : i1 to i32
    %c0_i32_0 = arith.constant 0 : i32
    %2 = arith.cmpi ne, %1, %c0_i32_0 : i32
    scf.if %2 {
      %cst_13 = arith.constant 0.000000e+00 : f32
      %28 = vector.broadcast %cst_13 : f32 to vector<2x128xf32>
      %c0_14 = arith.constant 0 : index
      %c0_15 = arith.constant 0 : index
      %29 = vector.load %arg4[%c0_14, %c0_15] : memref<2x128xf32, #tpu.memory_space<vmem>>, vector<2x128xf32>
      tpu.vector_store %arg4[%c0_14, %c0_15], %28 {strides = array<i32>} : memref<2x128xf32, #tpu.memory_space<vmem>>, vector<2x128xf32>,
    } else {
    }
    %c0 = arith.constant 0 : index
    %c0_1 = arith.constant 0 : index
    %3 = vector.load %arg1[%c0, %c0_1] : memref<128x32xbf16, #tpu.memory_space<vmem>>, vector<128x32xbf16>
    %c0_2 = arith.constant 0 : index
    %c0_3 = arith.constant 0 : index
    %4 = vector.load %arg2[%c0_2, %c0_3] : memref<32x128xbf16, #tpu.memory_space<vmem>>, vector<32x128xbf16>
    %cst = arith.constant dense<0.000000e+00> : vector<128x128xf32>
    %5 = tpu.matmul %3, %4, %cst {dimension_numbers = #tpu.dot_dimension_numbers<[1], [0], [0], [1], [0, 0, 1, 1], [], []>} : vector<128x32xbf16>, vector<32x128xbf16>, vector<128x128xf32> -> vector<128x128xf32>
    %c0_4 = arith.constant 0 : index
    %c0_5 = arith.constant 0 : index
    %6 = vector.load %arg3[%c0_4, %c0_5] : memref<1x128xf32, #tpu.memory_space<vmem>>, vector<1x128xf32>
    %7 = vector.broadcast %6 : vector<1x128xf32> to vector<128x128xf32>
    %8 = arith.addf %5, %7 : vector<128x128xf32>
    %c128_i32 = arith.constant 128 : i32
    %9 = arith.muli %arg0, %c128_i32 : i32
    %10 = tpu.iota {dimensions = array<i32: 0>} : vector<128x1xi32>
    %11 = vector.broadcast %9 : i32 to vector<128x1xi32>
    %12 = arith.addi %11, %10 : vector<128x1xi32>
    %c16_i32 = arith.constant 16 : i32
    %13 = vector.broadcast %c16_i32 : i32 to vector<128x1xi32>
    %14 = arith.cmpi slt, %12, %13 : vector<128x1xi32>
    %cst_6 = arith.constant 0.000000e+00 : f32
    %15 = vector.shape_cast %14 : vector<128x1xi1> to vector<128x1xi1>
    %16 = vector.broadcast %15 : vector<128x1xi1> to vector<128x128xi1>
    %17 = vector.broadcast %cst_6 : f32 to vector<128x128xf32>
    %18 = arith.select %16, %8, %17 : vector<128x128xi1>, vector<128x128xf32>
    %cst_7 = arith.constant dense<0.000000e+00> : vector<128xf32>
    %19 = vector.multi_reduction <add>, %18, %cst_7 [0] : vector<128x128xf32> to vector<128xf32>
    %20 = vector.shape_cast %19 : vector<128xf32> to vector<1x128xf32>
    %21 = arith.mulf %18, %18 : vector<128x128xf32>
    %cst_8 = arith.constant dense<0.000000e+00> : vector<128xf32>
    %22 = vector.multi_reduction <add>, %21, %cst_8 [0] : vector<128x128xf32> to vector<128xf32>
    %23 = vector.shape_cast %22 : vector<128xf32> to vector<1x128xf32>
    %c0_9 = arith.constant 0 : index
    %c0_10 = arith.constant 0 : index
    %24 = vector.load %arg4[%c0_9, %c0_10] : memref<2x128xf32, #tpu.memory_space<vmem>>, vector<2x128xf32>
    %25 = tpu.concatenate %20, %23 in 0 : vector<1x128xf32>, vector<1x128xf32> -> vector<2x128xf32>
    %26 = arith.addf %24, %25 : vector<2x128xf32>
    %c0_11 = arith.constant 0 : index
    %c0_12 = arith.constant 0 : index
    %27 = vector.load %arg4[%c0_11, %c0_12] : memref<2x128xf32, #tpu.memory_space<vmem>>, vector<2x128xf32>
    tpu.vector_store %arg4[%c0_11, %c0_12], %26 {strides = array<i32>} : memref<2x128xf32, #tpu.memory_space<vmem>>, vector<2x128xf32>,
    return
  }
  func.func @transform_0(%arg0: i32) -> (i32, i32) {
    %c0_i32 = arith.constant 0 : i32
    %c0_i32_0 = arith.constant 0 : i32
    return %arg0, %c0_i32 : i32, i32
  }
  func.func @transform_1(%arg0: i32) -> (i32, i32) {
    %c0_i32 = arith.constant 0 : i32
    %c0_i32_0 = arith.constant 0 : i32
    %c0_i32_1 = arith.constant 0 : i32
    return %c0_i32, %c0_i32_0 : i32, i32
  }
  func.func @transform_2(%arg0: i32) -> (i32, i32) {
    %c0_i32 = arith.constant 0 : i32
    %c0_i32_0 = arith.constant 0 : i32
    %c0_i32_1 = arith.constant 0 : i32
    return %c0_i32, %c0_i32_0 : i32, i32
  }
  func.func @transform_3(%arg0: i32) -> (i32, i32) {
    %c0_i32 = arith.constant 0 : i32
    %c0_i32_0 = arith.constant 0 : i32
    %c0_i32_1 = arith.constant 0 : i32
    return %c0_i32, %c0_i32_0 : i32, i32
  }
}

</mosaic_0001>

<bundles_post_ra>
// kernel: tpu_custom_call.1
= control target key start
LH: loop header
LB: loop body
LE: loop exit
PB: predicated region body
PF: predicated region fallthrough
CT: control target
= control target key end

     0   :  { %s508_s0 = inlined_call_operand.vmem [shape: bf16[128,32], index: 0, kind: input, shape index: {}]   ;;  %s509_s1 = inlined_call_operand.vmem [shape: bf16[32,128], index: 1, kind: input, shape index: {}]   ;;  %s510_s2 = inlined_call_operand.vmem [shape: f32[1,128], index: 2, kind: input, shape index: {}]   ;;  %s511_s3 = inlined_call_operand.hbm [shape: f32[2,128], index: 3, kind: output, shape index: {}]  }
   0x1   :  { %v406_v0 = vld [vmem:[%s509_s1 + $0x8] sm:$0xff]  ;;  %v405_v1 = vld [vmem:[%s509_s1] sm:$0xff] }
   0x2   :  { %128 = vmatpush.bf16.msra.mxu0 %v406_v0  ;;  %407 = vmatpush.bf16.msra.mxu1 %v406_v0 }
   0x3   :  { %408 = vmatpush.bf16.msra.mxu2 %v406_v0  ;;  %409 = vmatpush.bf16.msra.mxu3 %v406_v0 }
   0x4   :  { %8 = vsyncpa [#allocation3], 0  ;;  %v397_v2 = vld [vmem:[%s508_s0] sm:$0xff]  ;;  %v399_v3 = vld [vmem:[%s508_s0 + $0x10] sm:$0xff]  ;;  %vm97_vm0 = vcmask 261120   ;;  %v442_v10 = vmov 0.0  }
   0x5   :  { %v401_v4 = vld [vmem:[%s508_s0 + $0x20] sm:$0xff]  ;;  %v403_v5 = vld [vmem:[%s508_s0 + $0x30] sm:$0xff]  ;;  %v398_v6 = vld [vmem:[%s508_s0 + $0x8] sm:$0xff]  ;;  %20 = vst [vmem:[#allocation2] sm:$0x3] %v442_v10  ;;  %vm329_vm1 = vcmask 1040384  }
   0x6   :  { %129 = vmatpush.bf16.msra.mxu0 %v405_v1  ;;  %410 = vmatpush.bf16.msra.mxu1 %v405_v1  ;;  %v400_v7 = vld [vmem:[%s508_s0 + $0x18] sm:$0xff]  ;;  %v402_v8 = vld [vmem:[%s508_s0 + $0x28] sm:$0xff]  ;;  %v415_v13 = vld [vmem:[%s510_s2] ss:$0 sm:$0xff]  ;;  %s340_s8 = sshll.u32 %s511_s3, 4  ;;  %s341_s8 = int_to_ptr.hbm [resolvable:$true] %s340_s8 }
   0x7   :  { %411 = vmatpush.bf16.msra.mxu2 %v405_v1  ;;  %412 = vmatpush.bf16.msra.mxu3 %v405_v1  ;;  %v404_v9 = vld [vmem:[%s508_s0 + $0x38] sm:$0xff]  ;;  %s443_s0 = smov [#allocation2]  }
   0x8   :  { %s338_s2 = sshll.u32 %s443_s0, 4  ;;  %s339_s2 = int_to_ptr.vmem [resolvable:$true] %s338_s2 }
   0x9   :  { %389 = vmatmul.msk.bf16.vlgmr.msra.gmra.mxu0 %vm97_vm0, %v397_v2  ;;  %391 = vmatmul.msk.bf16.vlgmr.msra.gmra.mxu1 %vm97_vm0, %v399_v3 }
   0xa   :  { %393 = vmatmul.msk.bf16.vlgmr.msra.gmra.mxu2 %vm97_vm0, %v401_v4  ;;  %395 = vmatmul.msk.bf16.vlgmr.msra.gmra.mxu3 %vm97_vm0, %v403_v5 }
   0xc   :  { %v328_v44 = vld [vmem:[#allocation2] sm:$0x3] }
  0x19   :  { %390 = vmatmul.msk.bf16.gmra.mxu0 %vm97_vm0, %v398_v6  ;;  %392 = vmatmul.msk.bf16.gmra.mxu1 %vm97_vm0, %v400_v7 }
  0x1a   :  { %394 = vmatmul.msk.bf16.gmra.mxu2 %vm97_vm0, %v402_v8  ;;  %396 = vmatmul.msk.bf16.gmra.mxu3 %vm97_vm0, %v404_v9 }
  0x86   :  { %v131_v11 = vpop.f32.mrf.mxu0  ;;  %v141_v12 = vpop.f32.mrf.mxu1 }
  0x87   :  { %v132_v14 = vadd.f32 %v415_v13, %v131_v11 }
  0x89   :  { %v291_v20 = vmul.f32 %v132_v14, %v132_v14 }
  0x8d   :  { %v151_v15 = vpop.f32.mrf.mxu2  ;;  %v161_v16 = vpop.f32.mrf.mxu3 }
  0x8e   :  { %v133_v17 = vpop.f32.mrf.mxu0  ;;  %v143_v18 = vpop.f32.mrf.mxu1 }
  0x8f   :  { %v134_v19 = vadd.f32 %v415_v13, %v133_v17 }
  0x91   :  { %v270_v21 = vadd.f32 %v134_v19, %v132_v14  ;;  %v292_v22 = vmul.f32 %v134_v19, %v134_v19 }
  0x93   :  { %v285_v23 = vrot.slane %v270_v21, 4  ;;  %v307_v24 = vadd.f32 %v292_v22, %v291_v20 }
  0x95   :  { %v286_v25 = vadd.f32 %v285_v23, %v270_v21  ;;  %v322_v26 = vrot.slane %v307_v24, 4  ;;  %v153_v27 = vpop.f32.mrf.mxu2  ;;  %v163_v28 = vpop.f32.mrf.mxu3 }
  0x96   :  { %v136_v29 = vpop.f32.mrf.mxu0  ;;  %v146_v30 = vpop.f32.mrf.mxu1 }
  0x97   :  { %v287_v31 = vrot.slane %v286_v25, 2  ;;  %v323_v32 = vadd.f32 %v322_v26, %v307_v24 }
  0x99   :  { %v288_v33 = vadd.f32 %v287_v31, %v286_v25  ;;  %v324_v34 = vrot.slane %v323_v32, 2 }
  0x9b   :  { %v289_v35 = vrot.slane %v288_v33, 1  ;;  %v325_v36 = vadd.f32 %v324_v34, %v323_v32 }
  0x9d   :  { %v326_v37 = vrot.slane %v325_v36, 1  ;;  %v156_v38 = vpop.f32.mrf.mxu2  ;;  %v166_v39 = vpop.f32.mrf.mxu3  ;;  %v290_v42 = vadd.f32 %v289_v35, %v288_v33 }
  0x9e   :  { %v138_v40 = vpop.f32.mrf.mxu0  ;;  %v148_v41 = vpop.f32.mrf.mxu1 }
  0x9f   :  { %v327_v43 = vadd.f32 %v326_v37, %v325_v36 }
  0xa1   :  { %v330_v45 = vsel %vm329_vm1, %v290_v42, %v327_v43 }
  0xa2   :  { %v331_v46 = vadd.f32 %v330_v45, %v328_v44 }
  0xa4   :  { %332 = vst [vmem:[#allocation2] sm:$0x3] %v331_v46 }
  0xa5   :  { %v158_v47 = vpop.f32.mrf.mxu2  ;;  %v168_v48 = vpop.f32.mrf.mxu3  ;;  %343 = dma.vmem_to_hbm [thread:$0]  %s339_s2, 32, %s341_s8, [#allocation3]  }
  0xa6   :  { %440 = dma.done.wait [#allocation3], 32  }
  0xa7   :  { %441 = vsyncadd [#allocation3], 4294967264 }
  0xa8   :  { %348 = vsyncpa [#allocation3], 1 }

</bundles_post_ra>
